<compile_context>
chip_gen: v7x
topology: tpu7x:2x2x1
jax: 0.10.0
libtpu: 0.0.40
codegen_flags: <defaults>
</compile_context>

<pallas_src>
import jax
import jax.numpy as jnp
from jax import lax
from jax.experimental import pallas as pl
from jax.experimental.pallas import tpu as pltpu

ALPHA = 0.5
GAMMA = 1.0
FACTOR = 200.0

_LANES = 128
_SUBLANES = 8
_SCORES_BLOCK_BYTES = 2 * 1024 * 1024   # per-buffer budget for one scores row strip
_FOCAL_TILE_ROWS = 512                  # (512, 128) f32 = 256 KiB per input buffer


def _round_up(x, m):
    return (x + m - 1) // m * m


def _make_kernel(B, TILE_B, T_s, T_f, n_valid, mask_rows):
    """Build the fused kernel. All arguments are static Python ints/bools."""

    def kernel(scores_ref, x_ref, t_ref, tirg_ref, mil_ref, acc_t_ref, acc_m_ref):
        i = pl.program_id(0)
        last = pl.num_programs(0) - 1

        @pl.when(i == 0)
        def _init():
            acc_t_ref[...] = jnp.zeros_like(acc_t_ref)
            acc_m_ref[...] = jnp.zeros_like(acc_m_ref)

        # ------------- TIRG: softmax cross-entropy against the diagonal -------------
        @pl.when(i < T_s)
        def _tirg():
            s = scores_ref[...].astype(jnp.float32)               # (TILE_B, B)
            row0 = i * TILE_B
            rows = lax.broadcasted_iota(jnp.int32, (TILE_B, B), 0) + row0
            cols = lax.broadcasted_iota(jnp.int32, (TILE_B, B), 1)

            row_max = jnp.max(s, axis=-1, keepdims=True)                        # (TILE_B, 1)
            lse = row_max + jnp.log(jnp.sum(jnp.exp(s - row_max),
                                            axis=-1, keepdims=True))            # (TILE_B, 1)
            diag = jnp.sum(jnp.where(cols == rows, s, 0.0),
                           axis=-1, keepdims=True)                              # (TILE_B, 1)
            contrib = lse - diag
            if mask_rows:  # static: only emitted when the row dim was padded
                row_ids = lax.broadcasted_iota(jnp.int32, (TILE_B, 1), 0) + row0
                contrib = jnp.where(row_ids < B, contrib, 0.0)
            acc_t_ref[...] += jnp.sum(contrib)

        # ------------- focal-with-logits multi-label loss ----------------------------
        @pl.when(i < T_f)
        def _focal():
            x = x_ref[...].astype(jnp.float32)                    # (TILE_M, 128)
            t = t_ref[...].astype(jnp.float32)

            sp = jax.nn.softplus(-x)           # softplus(-x)
            log_sig = -sp                      # log sigmoid(x)
            log_sig_neg = log_sig - x          # log sigmoid(-x)
            sig = jnp.exp(log_sig)             # sigmoid(x)
            one_m_sig = jnp.exp(log_sig_neg)   # 1 - sigmoid(x) == sigmoid(-x)

            if GAMMA == 1.0:                   # static; pow is identity for gamma=1
                pow_neg, pow_pos = one_m_sig, sig
            else:
                pow_neg = jnp.power(one_m_sig, GAMMA)
                pow_pos = jnp.power(sig, GAMMA)

            # exact PyTorch semantics; padded tail uses t = -1 -> contributes 0
            loss = jnp.where(t == 1.0, ALPHA * pow_neg * log_sig, 0.0) \
                 + jnp.where(t == 0.0, (1.0 - ALPHA) * pow_pos * log_sig_neg, 0.0)
            acc_m_ref[...] += jnp.sum(loss)

        @pl.when(i == last)
        def _fin():
            tirg_ref[...] = acc_t_ref[...] / jnp.float32(B)
            mil_ref[...] = -(acc_m_ref[...] / jnp.float32(n_valid)) * jnp.float32(FACTOR)

    return kernel


def cpt_criterion(scores, logits, labels, *,
                  scores_block_bytes=_SCORES_BLOCK_BYTES,
                  focal_tile_rows=_FOCAL_TILE_ROWS):
    """Returns (matching_loss, mil_loss) as f32 scalars."""
    B = scores.shape[0]
    assert scores.shape == (B, B)
    N, C = logits.shape
    assert labels.shape == (N, C)

    # ---- scores: row-strip tiling; columns stay as the full (last) dim ----------
    # TODO(synk): for contrastive-scale B (~2-4k+ on v7x) switch the TIRG part to a
    # 2-D grid with an online (flash-style) logsumexp over column tiles.
    rows_budget = max(_SUBLANES,
                      (scores_block_bytes // max(B * 4, 1)) // _SUBLANES * _SUBLANES)
    TILE_B = min(_round_up(B, _SUBLANES), rows_budget)
    n_rows_pad = _round_up(B, TILE_B)
    T_s = n_rows_pad // TILE_B
    scores_p = scores.astype(jnp.float32)
    if n_rows_pad != B:
        scores_p = jnp.pad(scores_p, ((0, n_rows_pad - B), (0, 0)))

    # ---- focal inputs: flatten to a lane-dense (M, 128) slab --------------------
    n_valid = N * C
    M = pl.cdiv(n_valid, _LANES)
    TILE_M = min(_round_up(M, _SUBLANES), focal_tile_rows)
    M_pad = _round_up(M, TILE_M)
    T_f = M_pad // TILE_M
    pad_elems = M_pad * _LANES - n_valid
    x_flat = jnp.pad(logits.astype(jnp.float32).reshape(-1), (0, pad_elems),
                     constant_values=0.0).reshape(M_pad, _LANES)
    t_flat = jnp.pad(labels.astype(jnp.float32).reshape(-1), (0, pad_elems),
                     constant_values=-1.0).reshape(M_pad, _LANES)

    T = max(T_s, T_f)
    kernel = _make_kernel(B, TILE_B, T_s, T_f, n_valid, n_rows_pad != B)

    tirg, mil = pl.pallas_call(
        kernel,
        out_shape=(jax.ShapeDtypeStruct((1, 1), jnp.float32),
                   jax.ShapeDtypeStruct((1, 1), jnp.float32)),
        grid_spec=pltpu.PrefetchScalarGridSpec(
            num_scalar_prefetch=0,
            grid=(T,),
            in_specs=[
                # clamp the block index once a stream runs out of tiles; the
                # repeated block is not re-DMA'd and its work is gated by pl.when.
                pl.BlockSpec((TILE_B, B), lambda i: (jnp.minimum(i, T_s - 1), 0)),
                pl.BlockSpec((TILE_M, _LANES), lambda i: (jnp.minimum(i, T_f - 1), 0)),
                pl.BlockSpec((TILE_M, _LANES), lambda i: (jnp.minimum(i, T_f - 1), 0)),
            ],
            out_specs=(
                pl.BlockSpec((1, 1), lambda i: (0, 0)),
                pl.BlockSpec((1, 1), lambda i: (0, 0)),
            ),
            scratch_shapes=[pltpu.VMEM((1, 1), jnp.float32),
                            pltpu.VMEM((1, 1), jnp.float32)],
        ),
        compiler_params=pltpu.CompilerParams(
            # single reduction axis with a carried accumulator -> "arbitrary".
            dimension_semantics=("arbitrary",),
            vmem_limit_bytes=32 * 1024 * 1024,
        ),
    )(scores_p, x_flat, t_flat)
    return tirg[0, 0], mil[0, 0]


# ----------------------------------------------------------------------------
# pure-JAX reference (matches the PyTorch module)
# ----------------------------------------------------------------------------
def _ref(scores, logits, labels):
    Bq = scores.shape[0]
    lse = jax.scipy.special.logsumexp(scores, axis=-1)
    ce = jnp.mean(lse - scores[jnp.arange(Bq), jnp.arange(Bq)])
    sig = jax.nn.sigmoid(logits)
    ls = jax.nn.log_sigmoid(logits)
    lsn = jax.nn.log_sigmoid(-logits)
    loss = (labels == 1) * ALPHA * (1.0 - sig) ** GAMMA * ls \
         + (labels == 0) * (1 - ALPHA) * sig ** GAMMA * lsn
    return ce, -jnp.mean(loss) * FACTOR


if __name__ == "__main__":
    key = jax.random.PRNGKey(0)
    k1, k2, k3, k4, k5, k6 = jax.random.split(key, 6)

    fn = jax.jit(cpt_criterion,
                 static_argnames=("scores_block_bytes", "focal_tile_rows"))

    # ---- small default-shape check (single grid step) --------------------------
    B, N, C = 8, 8, 32
    scores = jax.random.normal(k1, (B, B), dtype=jnp.float32)
    logits = jax.random.normal(k2, (N, C), dtype=jnp.float32)
    labels = jax.random.bernoulli(k3, p=0.3, shape=(N, C)).astype(jnp.float32)

    matching_loss, mil_loss = fn(scores, logits, labels)
    jax.block_until_ready((matching_loss, mil_loss))

    ref_ce, ref_mil = _ref(scores, logits, labels)
    assert jnp.allclose(matching_loss, ref_ce, atol=1e-5, rtol=1e-5)
    assert jnp.allclose(mil_loss, ref_mil, atol=1e-4, rtol=1e-5)

    # ---- multi-tile grid path: padding, row masking, clamped index maps --------
    B2, N2, C2 = 20, 16, 200
    scores2 = jax.random.normal(k4, (B2, B2), dtype=jnp.float32)
    logits2 = jax.random.normal(k5, (N2, C2), dtype=jnp.float32)
    labels2 = jax.random.bernoulli(k6, p=0.3, shape=(N2, C2)).astype(jnp.float32)

    # tiny tile budgets -> TILE_B=8 (T_s=3, rows padded 20->24), TILE_M=8 (T_f=4)
    m2, f2 = fn(scores2, logits2, labels2,
                scores_block_bytes=8 * B2 * 4, focal_tile_rows=8)
    jax.block_until_ready((m2, f2))
    ref_ce2, ref_mil2 = _ref(scores2, logits2, labels2)
    assert jnp.allclose(m2, ref_ce2, atol=1e-5, rtol=1e-5)
    assert jnp.allclose(f2, ref_mil2, atol=1e-4, rtol=1e-5)

    print("KERNEL_OK")
</pallas_src>

<mosaic_0001>
module attributes {stable_mosaic.version = 11 : i64} {
  func.func @kernel(%arg0: i32, %arg1: memref<8x8xf32, #tpu.memory_space<vmem>>, %arg2: memref<8x128xf32, #tpu.memory_space<vmem>>, %arg3: memref<8x128xf32, #tpu.memory_space<vmem>>, %arg4: memref<1x1xf32, #tpu.memory_space<vmem>>, %arg5: memref<1x1xf32, #tpu.memory_space<vmem>>, %arg6: memref<1x1xf32, #tpu.memory_space<vmem>>, %arg7: memref<1x1xf32, #tpu.memory_space<vmem>>) attributes {dimension_semantics = [#tpu.dimension_semantics<arbitrary>], iteration_bounds = array<i64: 1>, scalar_prefetch = 0 : i64, scratch_operands = 2 : i64, tpu.core_type = #tpu.core_type<tc>, window_params = [{transform_indices = @transform_0, window_bounds = array<i64: 8, 8>}, {transform_indices = @transform_1, window_bounds = array<i64: 8, 128>}, {transform_indices = @transform_2, window_bounds = array<i64: 8, 128>}, {pipeline_mode = #tpu.pipeline_mode<synchronous>, transform_indices = @transform_3, window_bounds = array<i64: 1, 1>}, {pipeline_mode = #tpu.pipeline_mode<synchronous>, transform_indices = @transform_4, window_bounds = array<i64: 1, 1>}]} {
    %c0_i32 = arith.constant 0 : i32
    %0 = arith.cmpi eq, %arg0, %c0_i32 : i32
    %1 = arith.extui %0 : i1 to i32
    %c0_i32_0 = arith.constant 0 : i32
    %2 = arith.cmpi ne, %1, %c0_i32_0 : i32
    scf.if %2 {
      %cst = arith.constant 0.000000e+00 : f32
      %12 = vector.broadcast %cst : f32 to vector<1x1xf32>
      %c0 = arith.constant 0 : index
      %c0_6 = arith.constant 0 : index
      %13 = vector.load %arg6[%c0, %c0_6] : memref<1x1xf32, #tpu.memory_space<vmem>>, vector<1x1xf32>
      tpu.vector_store %arg6[%c0, %c0_6], %12 {strides = array<i32>} : memref<1x1xf32, #tpu.memory_space<vmem>>, vector<1x1xf32>,
      %cst_7 = arith.constant 0.000000e+00 : f32
      %14 = vector.broadcast %cst_7 : f32 to vector<1x1xf32>
      %c0_8 = arith.constant 0 : index
      %c0_9 = arith.constant 0 : index
      %15 = vector.load %arg7[%c0_8, %c0_9] : memref<1x1xf32, #tpu.memory_space<vmem>>, vector<1x1xf32>
      tpu.vector_store %arg7[%c0_8, %c0_9], %14 {strides = array<i32>} : memref<1x1xf32, #tpu.memory_space<vmem>>, vector<1x1xf32>,
    } else {
    }
    %c1_i32 = arith.constant 1 : i32
    %3 = arith.cmpi slt, %arg0, %c1_i32 : i32
    %4 = arith.extui %3 : i1 to i32
    %c0_i32_1 = arith.constant 0 : i32
    %5 = arith.cmpi ne, %4, %c0_i32_1 : i32
    scf.if %5 {
      %c0 = arith.constant 0 : index
      %c0_6 = arith.constant 0 : index
      %12 = vector.load %arg1[%c0, %c0_6] : memref<8x8xf32, #tpu.memory_space<vmem>>, vector<8x8xf32>
      %c8_i32 = arith.constant 8 : i32
      %13 = arith.muli %arg0, %c8_i32 : i32
      %14 = tpu.iota {dimensions = array<i32: 0>} : vector<8x8xi32>
      %15 = vector.broadcast %13 : i32 to vector<8x8xi32>
      %16 = arith.addi %14, %15 : vector<8x8xi32>
      %17 = tpu.iota {dimensions = array<i32: 1>} : vector<8x8xi32>
      %cst = arith.constant dense<0xFF800000> : vector<8xf32>
      %18 = vector.multi_reduction <maximumf>, %12, %cst [1] : vector<8x8xf32> to vector<8xf32>
      %19 = vector.shape_cast %18 : vector<8xf32> to vector<8x1xf32>
      %20 = vector.broadcast %19 : vector<8x1xf32> to vector<8x8xf32>
      %21 = arith.subf %12, %20 : vector<8x8xf32>
      %22 = math.exp %21 : vector<8x8xf32>
      %cst_7 = arith.constant dense<0.000000e+00> : vector<8xf32>
      %23 = vector.multi_reduction <add>, %22, %cst_7 [1] : vector<8x8xf32> to vector<8xf32>
      %24 = vector.shape_cast %23 : vector<8xf32> to vector<8x1xf32>
      %25 = math.log %24 : vector<8x1xf32>
      %26 = arith.addf %19, %25 : vector<8x1xf32>
      %27 = arith.cmpi eq, %17, %16 : vector<8x8xi32>
      %cst_8 = arith.constant 0.000000e+00 : f32
      %28 = vector.broadcast %cst_8 : f32 to vector<8x8xf32>
      %29 = arith.select %27, %12, %28 : vector<8x8xi1>, vector<8x8xf32>
      %cst_9 = arith.constant dense<0.000000e+00> : vector<8xf32>
      %30 = vector.multi_reduction <add>, %29, %cst_9 [1] : vector<8x8xf32> to vector<8xf32>
      %31 = vector.shape_cast %30 : vector<8xf32> to vector<8x1xf32>
      %32 = arith.subf %26, %31 : vector<8x1xf32>
      %c0_10 = arith.constant 0 : index
      %c0_11 = arith.constant 0 : index
      %33 = vector.load %arg6[%c0_10, %c0_11] : memref<1x1xf32, #tpu.memory_space<vmem>>, vector<1x1xf32>
      %34 = vector.shape_cast %32 : vector<8x1xf32> to vector<1x8x1xf32>
      %cst_12 = arith.constant dense<0.000000e+00> : vector<1xf32>
      %35 = vector.multi_reduction <add>, %34, %cst_12 [1, 2] : vector<1x8x1xf32> to vector<1xf32>
      %36 = vector.shape_cast %35 : vector<1xf32> to vector<1x1x1xf32>
      %37 = vector.extract %36[0, 0, 0] : f32 from vector<1x1x1xf32>
      %38 = vector.broadcast %37 : f32 to vector<1x1xf32>
      %39 = arith.addf %33, %38 : vector<1x1xf32>
      %c0_13 = arith.constant 0 : index
      %c0_14 = arith.constant 0 : index
      %40 = vector.load %arg6[%c0_13, %c0_14] : memref<1x1xf32, #tpu.memory_space<vmem>>, vector<1x1xf32>
      tpu.vector_store %arg6[%c0_13, %c0_14], %39 {strides = array<i32>} : memref<1x1xf32, #tpu.memory_space<vmem>>, vector<1x1xf32>,
    } else {
    }
    %c1_i32_2 = arith.constant 1 : i32
    %6 = arith.cmpi slt, %arg0, %c1_i32_2 : i32
    %7 = arith.extui %6 : i1 to i32
    %c0_i32_3 = arith.constant 0 : i32
    %8 = arith.cmpi ne, %7, %c0_i32_3 : i32
    scf.if %8 {
      %c0 = arith.constant 0 : index
      %c0_6 = arith.constant 0 : index
      %12 = vector.load %arg2[%c0, %c0_6] : memref<8x128xf32, #tpu.memory_space<vmem>>, vector<8x128xf32>
      %c0_7 = arith.constant 0 : index
      %c0_8 = arith.constant 0 : index
      %13 = vector.load %arg3[%c0_7, %c0_8] : memref<8x128xf32, #tpu.memory_space<vmem>>, vector<8x128xf32>
      %cst = arith.constant 0.000000e+00 : f32
      %14 = vector.broadcast %cst : f32 to vector<8x128xf32>
      %15 = arith.subf %14, %12 : vector<8x128xf32>
      %cst_9 = arith.constant 0.000000e+00 : f32
      %16 = vector.broadcast %cst_9 : f32 to vector<8x128xf32>
      %17 = arith.maximumf %15, %16 : vector<8x128xf32>
      %18 = vector.broadcast %cst_9 : f32 to vector<8x128xf32>
      %19 = arith.subf %15, %18 : vector<8x128xf32>
      %20 = arith.cmpf one, %19, %19 : vector<8x128xf32>
      %21 = vector.broadcast %cst_9 : f32 to vector<8x128xf32>
      %22 = arith.addf %15, %21 : vector<8x128xf32>
      %23 = math.absf %19 : vector<8x128xf32>
      %cst_10 = arith.constant 0.000000e+00 : f32
      %24 = vector.broadcast %cst_10 : f32 to vector<8x128xf32>
      %25 = arith.subf %24, %23 : vector<8x128xf32>
      %26 = math.exp %25 : vector<8x128xf32>
      %27 = math.log1p %26 : vector<8x128xf32>
      %28 = arith.addf %17, %27 : vector<8x128xf32>
      %29 = arith.select %20, %22, %28 : vector<8x128xi1>, vector<8x128xf32>
      %cst_11 = arith.constant 0.000000e+00 : f32
      %30 = vector.broadcast %cst_11 : f32 to vector<8x128xf32>
      %31 = arith.subf %30, %29 : vector<8x128xf32>
      %32 = arith.subf %31, %12 : vector<8x128xf32>
      %33 = math.exp %31 : vector<8x128xf32>
      %34 = math.exp %32 : vector<8x128xf32>
      %cst_12 = arith.constant 1.000000e+00 : f32
      %35 = vector.broadcast %cst_12 : f32 to vector<8x128xf32>
      %36 = arith.cmpf oeq, %13, %35 : vector<8x128xf32>
      %cst_13 = arith.constant 5.000000e-01 : f32
      %37 = vector.broadcast %cst_13 : f32 to vector<8x128xf32>
      %38 = arith.mulf %37, %34 : vector<8x128xf32>
      %39 = arith.mulf %38, %31 : vector<8x128xf32>
      %cst_14 = arith.constant 0.000000e+00 : f32
      %40 = vector.broadcast %cst_14 : f32 to vector<8x128xf32>
      %41 = arith.select %36, %39, %40 : vector<8x128xi1>, vector<8x128xf32>
      %cst_15 = arith.constant 0.000000e+00 : f32
      %42 = vector.broadcast %cst_15 : f32 to vector<8x128xf32>
      %43 = arith.cmpf oeq, %13, %42 : vector<8x128xf32>
      %cst_16 = arith.constant 5.000000e-01 : f32
      %44 = vector.broadcast %cst_16 : f32 to vector<8x128xf32>
      %45 = arith.mulf %44, %33 : vector<8x128xf32>
      %46 = arith.mulf %45, %32 : vector<8x128xf32>
      %cst_17 = arith.constant 0.000000e+00 : f32
      %47 = vector.broadcast %cst_17 : f32 to vector<8x128xf32>
      %48 = arith.select %43, %46, %47 : vector<8x128xi1>, vector<8x128xf32>
      %49 = arith.addf %41, %48 : vector<8x128xf32>
      %c0_18 = arith.constant 0 : index
      %c0_19 = arith.constant 0 : index
      %50 = vector.load %arg7[%c0_18, %c0_19] : memref<1x1xf32, #tpu.memory_space<vmem>>, vector<1x1xf32>
      %51 = vector.shape_cast %49 : vector<8x128xf32> to vector<1x8x128xf32>
      %cst_20 = arith.constant dense<0.000000e+00> : vector<1xf32>
      %52 = vector.multi_reduction <add>, %51, %cst_20 [1, 2] : vector<1x8x128xf32> to vector<1xf32>
      %53 = vector.shape_cast %52 : vector<1xf32> to vector<1x1x1xf32>
      %54 = vector.extract %53[0, 0, 0] : f32 from vector<1x1x1xf32>
      %55 = vector.broadcast %54 : f32 to vector<1x1xf32>
      %56 = arith.addf %50, %55 : vector<1x1xf32>
      %c0_21 = arith.constant 0 : index
      %c0_22 = arith.constant 0 : index
      %57 = vector.load %arg7[%c0_21, %c0_22] : memref<1x1xf32, #tpu.memory_space<vmem>>, vector<1x1xf32>
      tpu.vector_store %arg7[%c0_21, %c0_22], %56 {strides = array<i32>} : memref<1x1xf32, #tpu.memory_space<vmem>>, vector<1x1xf32>,
    } else {
    }
    %c0_i32_4 = arith.constant 0 : i32
    %9 = arith.cmpi eq, %arg0, %c0_i32_4 : i32
    %10 = arith.extui %9 : i1 to i32
    %c0_i32_5 = arith.constant 0 : i32
    %11 = arith.cmpi ne, %10, %c0_i32_5 : i32
    scf.if %11 {
      %c0 = arith.constant 0 : index
      %c0_6 = arith.constant 0 : index
      %12 = vector.load %arg6[%c0, %c0_6] : memref<1x1xf32, #tpu.memory_space<vmem>>, vector<1x1xf32>
      %cst = arith.constant 8.000000e+00 : f32
      %13 = vector.broadcast %cst : f32 to vector<1x1xf32>
      %14 = arith.divf %12, %13 : vector<1x1xf32>
      %c0_7 = arith.constant 0 : index
      %c0_8 = arith.constant 0 : index
      %15 = vector.load %arg4[%c0_7, %c0_8] : memref<1x1xf32, #tpu.memory_space<vmem>>, vector<1x1xf32>
      tpu.vector_store %arg4[%c0_7, %c0_8], %14 {strides = array<i32>} : memref<1x1xf32, #tpu.memory_space<vmem>>, vector<1x1xf32>,
      %c0_9 = arith.constant 0 : index
      %c0_10 = arith.constant 0 : index
      %16 = vector.load %arg7[%c0_9, %c0_10] : memref<1x1xf32, #tpu.memory_space<vmem>>, vector<1x1xf32>
      %cst_11 = arith.constant 2.560000e+02 : f32
      %17 = vector.broadcast %cst_11 : f32 to vector<1x1xf32>
      %18 = arith.divf %16, %17 : vector<1x1xf32>
      %cst_12 = arith.constant 0.000000e+00 : f32
      %19 = vector.broadcast %cst_12 : f32 to vector<1x1xf32>
      %20 = arith.subf %19, %18 : vector<1x1xf32>
      %cst_13 = arith.constant 2.000000e+02 : f32
      %21 = vector.broadcast %cst_13 : f32 to vector<1x1xf32>
      %22 = arith.mulf %20, %21 : vector<1x1xf32>
      %c0_14 = arith.constant 0 : index
      %c0_15 = arith.constant 0 : index
      %23 = vector.load %arg5[%c0_14, %c0_15] : memref<1x1xf32, #tpu.memory_space<vmem>>, vector<1x1xf32>
      tpu.vector_store %arg5[%c0_14, %c0_15], %22 {strides = array<i32>} : memref<1x1xf32, #tpu.memory_space<vmem>>, vector<1x1xf32>,
    } else {
    }
    return
  }
  func.func @transform_0(%arg0: i32) -> (i32, i32) {
    %c0_i32 = arith.constant 0 : i32
    %0 = arith.minsi %arg0, %c0_i32 : i32
    %c0_i32_0 = arith.constant 0 : i32
    %c0_i32_1 = arith.constant 0 : i32
    return %0, %c0_i32_0 : i32, i32
  }
  func.func @transform_1(%arg0: i32) -> (i32, i32) {
    %c0_i32 = arith.constant 0 : i32
    %0 = arith.minsi %arg0, %c0_i32 : i32
    %c0_i32_0 = arith.constant 0 : i32
    %c0_i32_1 = arith.constant 0 : i32
    return %0, %c0_i32_0 : i32, i32
  }
  func.func @transform_2(%arg0: i32) -> (i32, i32) {
    %c0_i32 = arith.constant 0 : i32
    %0 = arith.minsi %arg0, %c0_i32 : i32
    %c0_i32_0 = arith.constant 0 : i32
    %c0_i32_1 = arith.constant 0 : i32
    return %0, %c0_i32_0 : i32, i32
  }
  func.func @transform_3(%arg0: i32) -> (i32, i32) {
    %c0_i32 = arith.constant 0 : i32
    %c0_i32_0 = arith.constant 0 : i32
    %c0_i32_1 = arith.constant 0 : i32
    return %c0_i32, %c0_i32_0 : i32, i32
  }
  func.func @transform_4(%arg0: i32) -> (i32, i32) {
    %c0_i32 = arith.constant 0 : i32
    %c0_i32_0 = arith.constant 0 : i32
    %c0_i32_1 = arith.constant 0 : i32
    return %c0_i32, %c0_i32_0 : i32, i32
  }
}

</mosaic_0001>

<bundles_post_ra>
// kernel: cpt_criterion.1
= control target key start
LH: loop header
LB: loop body
LE: loop exit
PB: predicated region body
PF: predicated region fallthrough
CT: control target
= control target key end

     0   :  { %10 = vsyncpa [#allocation5], 0  ;;  %vm37_vm0 = vcmask 64512   ;;  %s300_s0 = inlined_call_operand.vmem [shape: f32[8,8], index: 0, kind: input, shape index: {}]   ;;  %s301_s1 = inlined_call_operand.vmem [shape: f32[8,128], index: 1, kind: input, shape index: {}]   ;;  %s302_s2 = inlined_call_operand.vmem [shape: f32[8,128], index: 2, kind: input, shape index: {}]   ;;  %s303_s3 = inlined_call_operand.hbm [shape: f32[1,1], index: 3, kind: output, shape index: {0}]   ;;  %s304_s4 = inlined_call_operand.hbm [shape: f32[1,1], index: 4, kind: output, shape index: {1}]  }
   0x1   :  { %v29_v0 = vld [vmem:[%s300_s0] sm:$0xff] }
   0x2   :  { %11 = vsyncpa [#allocation7], 0  ;;  %v38_v1 = vsel %vm37_vm0, %v29_v0, -inf  ;;  %v31_v2 = vlaneseq  ;;  %v72_v7 = vld [vmem:[%s301_s1] sm:$0xff]  ;;  %vm57_vm6 = vcmask 7168   ;;  %vm22_vm7 = vcmask 0  }
   0x3   :  { %39 = vmax.xlane.f32.xlu0 %v38_v1  ;;  %v74_v8 = vsub.f32 0.0, %v72_v7  ;;  %v73_v37 = vld [vmem:[%s302_s2] sm:$0xff]  ;;  %v230_v50 = vmov 0.0   ;;  %s231_s20 = smov [#allocation4]   ;;  %s232_s22 = smov [#allocation6]  }
   0x4   :  { %v32_v3 = vshrl.u32 %v31_v2, 7  ;;  %v36_v4 = vand.u32 127, %v31_v2  ;;  %vm99_vm4 = vcmp.eq.f32.partialorder %v73_v37, 1.0  ;;  %vm103_vm5 = vcmp.eq.f32.partialorder %v73_v37, 0.0  ;;  %23 = vst.msk [vmem:[#allocation2] sm:$0x1] %vm22_vm7, %v230_v50 }
   0x5   :  { %v78_v9 = vand.u32 2147483647, %v74_v8  ;;  %v75_v23 = vmax.f32 %v74_v8, 0.0  ;;  %vm76_vm3 = vcmp.ne.f32.partialorder %v74_v8, %v74_v8  ;;  %24 = vst.msk [vmem:[#allocation3] sm:$0x1] %vm22_vm7, %v230_v50  ;;  %s141_s21 = sshll.u32 %s231_s20, 4  ;;  %s142_s21 = int_to_ptr.vmem [resolvable:$true] %s141_s21 }
   0x6   :  { %vm50_vm1 = vcmp.eq.s32.totalorder %v36_v4, %v32_v3  ;;  %s151_s23 = sshll.u32 %s232_s22, 4  ;;  %s182_s24 = scalar_lea.vmem %s142_s21, 16  ;;  %s152_s23 = int_to_ptr.vmem [resolvable:$true] %s151_s23 }
   0x7   :  { %v51_v5 = vsel %vm50_vm1, %v29_v0, 0.0  ;;  %v79_v10 = vsub.f32 0.0, %v78_v9  ;;  %p183_p0 = scmp.ne.s32.totalorder %s142_s21, %s182_s24  ;;  %s186_s25 = scalar_lea.vmem %s142_s21, 32 }
   0x8   :  { %v52_v6 = vsel %vm37_vm0, %v51_v5, 0.0  ;;  %p187_p1 = scmp.lt.s32.totalorder %s142_s21, %s142_s21  ;;  %p188_p2 = scmp.lt.s32.totalorder %s186_s25, %s182_s24 }
   0x9   :  { %53 = vadd.xlane.f32.xlu1 %v52_v6  ;;  %v80_v11 = vmul.f32 1.442695, %v79_v10 }
   0xa   :  { %p189_p3 = por %p188_p2, %p187_p1 }
   0xb   :  { %170 = vpow2.f32 %v80_v11  ;;  %v56_v1 = vld [vmem:[#allocation2] sm:$0x1] }
   0xc   :  { %v108_v2 = vld [vmem:[#allocation3] sm:$0x1]  ;;  %p190_p4 = pnand %p189_p3, %p183_p0 }
  0x15   :  { %v171_v12 = vpop.eup %170 }
  0x16   :  { %v82_v14 = vadd.f32 1.0, %v171_v12  ;;  %v85_v17 = vmul.f32 -0.5, %v171_v12  ;;  %v88_v20 = vand.u32 2147483647, %v171_v12 }
  0x18   :  { %172 = vlog2.f32 %v82_v14  ;;  %v86_v18 = vadd.f32 1.0, %v85_v17  ;;  %vm89_vm2 = vcmp.lt.f32.partialorder %v88_v20, 0.0004427343 }
  0x1a   :  { %v87_v22 = vmul.f32 %v171_v12, %v86_v18 }
  0x22   :  { %v173_v19 = vpop.eup %172 }
  0x23   :  { %v84_v21 = vmul.f32 0.6931472, %v173_v19 }
  0x25   :  { %v90_v25 = vsel %vm89_vm2, %v87_v22, %v84_v21 }
  0x26   :  { %v91_v27 = vadd.f32 %v90_v25, %v75_v23 }
  0x28   :  { %v92_v28 = vsel %vm76_vm3, %v74_v8, %v91_v27 }
  0x29   :  { %v93_v29 = vsub.f32 0.0, %v92_v28 }
  0x2b   :  { %v94_v30 = vsub.f32 %v93_v29, %v72_v7  ;;  %v95_v31 = vmul.f32 1.442695, %v93_v29 }
  0x2d   :  { %v97_v32 = vmul.f32 1.442695, %v94_v30 }
  0x90   :  { %v40_v13 = vpop.xlane.xlu0 %39 }
  0x91   :  { %v41_v15 = vsub.f32 %v29_v0, %v40_v13 }
  0x93   :  { %v42_v16 = vmul.f32 1.442695, %v41_v15 }
  0x95   :  { %174 = vpow2.f32 %v42_v16 }
  0x96   :  { %176 = vpow2.f32 %v95_v31  ;;  %v54_v46 = vpop.xlane.xlu1 %53 }
  0x97   :  { %178 = vpow2.f32 %v97_v32 }
  0x9f   :  { %v175_v24 = vpop.eup %174 }
  0xa0   :  { %v44_v26 = vsel %vm37_vm0, %v175_v24, 0.0  ;;  %v177_v33 = vpop.eup %176 }
  0xa1   :  { %45 = vadd.xlane.f32.xlu0 %v44_v26  ;;  %v179_v34 = vpop.eup %178  ;;  %v104_v35 = vmul.f32 0.5, %v177_v33 }
  0xa2   :  { %v100_v36 = vmul.f32 0.5, %v179_v34 }
  0xa3   :  { %v105_v38 = vmul.f32 %v104_v35, %v94_v30 }
  0xa4   :  { %v101_v39 = vmul.f32 %v100_v36, %v93_v29 }
  0xa5   :  { %v106_v40 = vsel %vm103_vm5, %v105_v38, 0.0 }
  0xa6   :  { %v102_v41 = vsel %vm99_vm4, %v101_v39, 0.0 }
  0xa7   :  { %v107_v42 = vadd.f32 %v106_v40, %v102_v41 }
  0xa9   :  { %109 = vadd.xlane.f32.xlu0 %v107_v42 }
 0x12e   :  { %v46_v43 = vpop.xlane.xlu0 %45 }
 0x12f   :  { %180 = vlog2.f32 %v46_v43 }
 0x136   :  { %v110_v51 = vpop.xlane.xlu0 %109 }
 0x137   :  { %v111_v52 = vrot.slane %v110_v51, 4 }
 0x139   :  { %v181_v44 = vpop.eup %180  ;;  %v112_v53 = vadd.f32 %v111_v52, %v110_v51 }
 0x13a   :  { %v48_v45 = vmul.f32 0.6931472, %v181_v44 }
 0x13b   :  { %v113_v54 = vrot.slane %v112_v53, 2 }
 0x13c   :  { %v49_v47 = vadd.f32 %v48_v45, %v40_v13 }
 0x13d   :  { %v114_v58 = vadd.f32 %v113_v54, %v112_v53 }
 0x13e   :  { %v55_v48 = vsub.f32 %v49_v47, %v54_v46 }
 0x13f   :  { %v115_v61 = vrot.slane %v114_v58, 1 }
 0x140   :  { %v58_v49 = vsel %vm57_vm6, %v55_v48, 0.0 }
 0x141   :  { %59 = vadd.xlane.f32.xlu1 %v58_v49  ;;  %v116_v0 = vadd.f32 %v115_v61, %v114_v58 }
 0x1ce   :  { %v60_v55 = vpop.xlane.xlu1 %59 }
 0x1cf   :  { %v61_v56 = vrot.slane %v60_v55, 4 }
 0x1d1   :  { %v62_v57 = vadd.f32 %v61_v56, %v60_v55 }
 0x1d3   :  { %v63_v59 = vrot.slane %v62_v57, 2 }
 0x1d5   :  { %v64_v60 = vadd.f32 %v63_v59, %v62_v57 }
 0x1d7   :  { %v65_v62 = vrot.slane %v64_v60, 1 }
 0x1d9   :  { %v66_v63 = vadd.f32 %v65_v62, %v64_v60 }
 0x1db   :  { %163 = vpush %v66_v63 }
 0x1dc   :  { %165 = vpush %v116_v0 }
 0x20c   :  { %s164_s2 = spop %163 }
 0x20d   :  { %v68_v3 = vstv %s164_s2  ;;  %s166_s19 = spop %165 }
 0x20e   :  { %v69_v4 = vadd.f32 %v68_v3, %v56_v1  ;;  %v118_v5 = vstv %s166_s19 }
 0x20f   :  { %v119_v6 = vadd.f32 %v118_v5, %v108_v2 }
 0x210   :  { %71 = vst.msk [vmem:[#allocation2] sm:$0x1] %vm22_vm7, %v69_v4 }
 0x211   :  { %120 = vst.msk [vmem:[#allocation3] sm:$0x1] %vm22_vm7, %v119_v6 }
 0x217   :  { %v124_v7 = vld [vmem:[#allocation2] sm:$0x1] }
 0x218   :  { %v126_v8 = vmul.f32 0.125, %v124_v7  ;;  %v129_v9 = vld [vmem:[#allocation3] sm:$0x1] }
 0x219   :  { %v131_v10 = vmul.f32 0.00390625, %v129_v9 }
 0x21a   :  { %128 = vst.msk [vmem:[#allocation4] sm:$0x1] %vm22_vm7, %v126_v8 }
 0x21b   :  { %193 = shalt.err (!%p190_p4)
}
 0x21c   :  { %s194_s28 = scalar_lea.hbm %s303_s3, 16 }
 0x21d   :  { %p195_p5 = scmp.ne.s32.totalorder %s303_s3, %s194_s28  ;;  %p198_p6 = scmp.lt.u32.totalorder %s194_s28, %s303_s3 }
 0x21f   :  { %p200_p7 = pnand %p198_p6, %p195_p5 }
 0x221   :  { %203 = shalt.err (!%p200_p7)
}
 0x222   :  { %144 = dma.vmem_to_hbm [thread:$0]  %s142_s21, 16, %s303_s3, [#allocation5]   ;;  %v132_v11 = vsub.f32 0.0, %v131_v10 }
 0x223   :  { %s204_s9 = scalar_lea.vmem %s152_s23, 16  ;;  %s208_s10 = scalar_lea.vmem %s152_s23, 32 }
 0x224   :  { %v133_v12 = vmul.f32 200.0, %v132_v11  ;;  %p205_p8 = scmp.ne.s32.totalorder %s152_s23, %s204_s9  ;;  %p209_p9 = scmp.lt.s32.totalorder %s152_s23, %s152_s23 }
 0x225   :  { %p210_p10 = scmp.lt.s32.totalorder %s208_s10, %s204_s9 }
 0x226   :  { %134 = vst.msk [vmem:[#allocation6] sm:$0x1] %vm22_vm7, %v133_v12 }
 0x227   :  { %p211_p11 = por %p210_p10, %p209_p9 }
 0x229   :  { %p212_p12 = pnand %p211_p11, %p205_p8 }
 0x22b   :  { %215 = shalt.err (!%p212_p12)
}
 0x22c   :  { %s216_s13 = scalar_lea.hbm %s304_s4, 16 }
 0x22d   :  { %p217_p13 = scmp.ne.s32.totalorder %s304_s4, %s216_s13  ;;  %p220_p0 = scmp.lt.u32.totalorder %s216_s13, %s304_s4 }
 0x22f   :  { %p222_p1 = pnand %p220_p0, %p217_p13 }
 0x231   :  { %225 = shalt.err (!%p222_p1)
}
 0x232   :  { %154 = dma.vmem_to_hbm [thread:$0]  %s152_s23, 16, %s304_s4, [#allocation7]  }
 0x233   :  { %226 = dma.done.wait [#allocation5], 16  }
 0x234   :  { %227 = vsyncadd [#allocation5], 4294967280 }
 0x235   :  { %228 = dma.done.wait [#allocation7], 16  }
 0x236   :  { %229 = vsyncadd [#allocation7], 4294967280 }
 0x237   :  { %161 = vsyncpa [#allocation5], 1 }
 0x238   :  { %162 = vsyncpa [#allocation7], 1 }

</bundles_post_ra>
